<compile_context>
chip_gen: v6e
topology: v6e:2x2x1
jax: 0.10.0
libtpu: 0.0.40
codegen_flags: <defaults>
</compile_context>

<pallas_src>
import functools

import jax
import jax.numpy as jnp
from jax.experimental import pallas as pl
from jax.experimental.pallas import tpu as pltpu


def _hardswish(x):
    return x * jnp.clip(x + 3.0, 0.0, 6.0) * (1.0 / 6.0)


def _context_gen_kernel(x_ref, wj_ref, bias_ref, wf_ref, bf_ref, wt_ref, bt_ref,
                        hc_ref, gcf_ref, gct_ref, cf_acc, ht_acc,
                        *, t_total, f_dim):
    """One (batch-block, T-tile) grid step.

    x_ref   : (bb, C_in, F, tt)  native NCHW activation tile
    wj_ref  : (Cd, C_in)         joint conv weight, BN scale folded, transposed
    bias_ref: (Cd, 1)            folded BN bias
    wf_ref/wt_ref : (E, Cd)      conv_f / conv_t weights, transposed
    bf_ref/bt_ref : (E, 1)       conv_f / conv_t biases
    hc_ref  : (bb, Cd, 1)        h_c output (resident across T tiles)
    gcf_ref : (bb, E, F)         g_cf output (resident across T tiles)
    gct_ref : (bb, E, tt)        g_ct output tile (streamed per T tile)
    cf_acc  : (bb, C_in, F) f32  running mean-over-T accumulator
    ht_acc  : (bb, Cd, 1)   f32  running sum of hardswish(joint(ct)) over T
    """
    t = pl.program_id(1)
    nt = pl.num_programs(1)
    bb, c_in = x_ref.shape[0], x_ref.shape[1]
    cd = wj_ref.shape[0]
    e = wf_ref.shape[0]

    # Single load of the tile; pooling accumulates in fp32 regardless of the
    # input dtype (so a bf16 activation input is supported loss-free).
    x = x_ref[...].astype(jnp.float32)

    @pl.when(t == 0)
    def _():
        cf_acc[...] = jnp.zeros_like(cf_acc)
        ht_acc[...] = jnp.zeros_like(ht_acc)

    # cf: running mean over the full T axis (lane reduce per tile).
    # TODO(synk): if a bundle dump ever shows this lane reduce XLU-bound,
    #             convert it to an MXU matmul against a ones((tt, 1)) vector.
    cf_acc[...] += jnp.sum(x, axis=3) * (1.0 / t_total)

    # ct for this tile: mean over F (sublane reduce) -> (bb, C_in, tt).
    ct = jnp.mean(x, axis=2)

    # Time branch, streamed per T tile: joint 1x1 conv (BN scale pre-folded) +
    # bias + hardswish, then conv_t; stored as a lane-dense (bb, E, tt) slab.
    wj_b = jnp.broadcast_to(wj_ref[...], (bb, cd, c_in))
    h_t = _hardswish(
        jnp.einsum("bdc,bct->bdt", wj_b, ct,
                   preferred_element_type=jnp.float32) + bias_ref[...])
    ht_acc[...] += jnp.sum(h_t, axis=2, keepdims=True)

    wt_b = jnp.broadcast_to(wt_ref[...], (bb, e, cd))
    gct_ref[...] = (jnp.einsum("bed,bdt->bet", wt_b, h_t,
                               preferred_element_type=jnp.float32)
                    + bt_ref[...]).astype(gct_ref.dtype)

    # Frequency branch + h_c: finalized once all T tiles have been accumulated.
    @pl.when(t == nt - 1)
    def _():
        h_f = _hardswish(
            jnp.einsum("bdc,bcf->bdf", wj_b, cf_acc[...],
                       preferred_element_type=jnp.float32) + bias_ref[...])
        wf_b = jnp.broadcast_to(wf_ref[...], (bb, e, cd))
        gcf_ref[...] = (jnp.einsum("bed,bdf->bef", wf_b, h_f,
                                   preferred_element_type=jnp.float32)
                        + bf_ref[...]).astype(gcf_ref.dtype)
        hc = (jnp.sum(h_f, axis=2, keepdims=True) + ht_acc[...]) \
            * (1.0 / (f_dim + t_total))
        hc_ref[...] = hc.astype(hc_ref.dtype)


def _vmem_capacity_bytes():
    try:
        return int(pltpu.get_tpu_info().vmem_capacity_bytes)
    except Exception:
        return 64 << 20   # conservative: v7x per-TensorCore VMEM


def _pick_tiling(B, C_in, F, T, vmem_cap, itemsize):
    """Choose (batch block bb, T tile tt).

    * keep the (double-buffered) x tile within ~1/8 of physical VMEM so DMAs
      are large (HBM roofline) without starving the rest of the kernel,
    * bb divides B, preferring an even number of grid steps >= 2 so the
      "parallel" batch axis splits cleanly across v7x's two TensorCores,
    * tt is either T itself or a multiple of 128 dividing T (layout rule).
    """
    budget = max(1 << 20, min(vmem_cap // 8, 24 << 20))
    per_elem = C_in * F * T * itemsize
    if per_elem <= budget:
        max_bb = max(1, budget // per_elem)
        cands = [d for d in range(1, B + 1) if B % d == 0 and d <= max_bb]

        def pref(d):
            nb = B // d
            return (nb >= 2 and nb % 2 == 0, nb >= 2, d)

        return max(cands, key=pref), T
    divs = [d for d in range(128, T, 128) if T % d == 0]
    fitting = [d for d in divs if C_in * F * d * itemsize <= budget]
    if fitting:
        return 1, max(fitting)
    if divs:
        return 1, min(divs)
    # TODO(synk): T has no 128-multiple divisor; fall back to un-tiled T (may
    #             exceed the VMEM budget for extreme shapes).
    return 1, T


def context_gen_pallas(x_nchw, params, stride=1, t_tile=None):
    """x_nchw: (B, C_in, F, T). Returns (h_c, g_cf, g_ct) in PyTorch NCHW shapes."""
    assert stride == 1, "stride>1 AvgPool2d pool_f/pool_t is not implemented"
    B, C_in, F, T = x_nchw.shape
    wj, scale, bias = params["wj"], params["scale"], params["bias"]
    wf, bf, wt, bt = params["wf"], params["bf"], params["wt"], params["bt"]
    Cd = wj.shape[1]
    E = wf.shape[1]

    # Fold eval-mode BN scale into the joint-conv weight (exact) and
    # pre-transpose all weights so the channel contraction is the lhs last dim
    # and spatial stays on lanes of every operand / result.
    wj_t = jnp.transpose(wj * scale, (1, 0)).astype(jnp.float32)    # (Cd, C_in)
    bias_c = jnp.reshape(bias, (Cd, 1)).astype(jnp.float32)
    wf_t = jnp.transpose(wf, (1, 0)).astype(jnp.float32)            # (E, Cd)
    wt_t = jnp.transpose(wt, (1, 0)).astype(jnp.float32)            # (E, Cd)
    bf_c = jnp.reshape(bf, (E, 1)).astype(jnp.float32)
    bt_c = jnp.reshape(bt, (E, 1)).astype(jnp.float32)

    itemsize = x_nchw.dtype.itemsize
    vmem_cap = _vmem_capacity_bytes()
    bb, tt = _pick_tiling(B, C_in, F, T, vmem_cap, itemsize)
    if t_tile is not None:
        assert T % t_tile == 0 and (t_tile == T or t_tile % 128 == 0)
        tt = t_tile
    nb, nt = B // bb, T // tt

    out_shape = (
        jax.ShapeDtypeStruct((B, Cd, 1), jnp.float32),   # h_c
        jax.ShapeDtypeStruct((B, E, F), jnp.float32),    # g_cf (spatial on lanes)
        jax.ShapeDtypeStruct((B, E, T), jnp.float32),    # g_ct (spatial on lanes)
    )
    in_specs = [
        pl.BlockSpec((bb, C_in, F, tt), lambda b, t: (b, 0, 0, t)),  # x (NCHW)
        pl.BlockSpec((Cd, C_in), lambda b, t: (0, 0)),               # wj folded
        pl.BlockSpec((Cd, 1), lambda b, t: (0, 0)),                  # BN bias
        pl.BlockSpec((E, Cd), lambda b, t: (0, 0)),                  # wf
        pl.BlockSpec((E, 1), lambda b, t: (0, 0)),                   # bf
        pl.BlockSpec((E, Cd), lambda b, t: (0, 0)),                  # wt
        pl.BlockSpec((E, 1), lambda b, t: (0, 0)),                   # bt
    ]
    out_specs = (
        pl.BlockSpec((bb, Cd, 1), lambda b, t: (b, 0, 0)),   # resident over T
        pl.BlockSpec((bb, E, F), lambda b, t: (b, 0, 0)),    # resident over T
        pl.BlockSpec((bb, E, tt), lambda b, t: (b, 0, t)),   # streamed per tile
    )
    scratch_shapes = [
        pltpu.VMEM((bb, C_in, F), jnp.float32),   # cf (mean over T) accumulator
        pltpu.VMEM((bb, Cd, 1), jnp.float32),     # running sum of h_t over T
    ]

    # VMEM budget: double-buffered in/out blocks + weights + scratch + headroom,
    # capped below the physical per-core capacity (leave compiler headroom).
    x_block = bb * C_in * F * tt * itemsize
    w_bytes = (Cd * C_in + 2 * E * Cd + Cd + 2 * E) * 4
    out_block = bb * (Cd + E * F + E * tt) * 4
    scratch_bytes = bb * (C_in * F + Cd) * 4
    needed = 2 * x_block + 2 * w_bytes + 2 * out_block + scratch_bytes + (2 << 20)
    cap = max(vmem_cap - (16 << 20), 32 << 20)
    vmem_limit = int(min(max(needed, 32 << 20), cap))

    h_c, g_cf, g_ct = pl.pallas_call(
        functools.partial(_context_gen_kernel, t_total=T, f_dim=F),
        out_shape=out_shape,
        grid=(nb, nt),
        in_specs=in_specs,
        out_specs=out_specs,
        scratch_shapes=scratch_shapes,
        compiler_params=pltpu.CompilerParams(
            dimension_semantics=("parallel", "arbitrary"),
            vmem_limit_bytes=vmem_limit),
    )(x_nchw, wj_t, bias_c, wf_t, bf_c, wt_t, bt_c)

    # Cheap reshapes back to PyTorch NCHW output shapes (no transposes).
    return (h_c[:, :, :, None],        # (B, Cd, 1, 1)
            g_cf[:, :, :, None],       # (B, E, F, 1)
            g_ct[:, :, None, :])       # (B, E, 1, T)


def context_gen_reference(x_nchw, params):
    """Plain-JAX fp32 reference mirroring the PyTorch forward (NCHW)."""
    wj, scale, bias = params["wj"], params["scale"], params["bias"]
    wf, bf, wt, bt = params["wf"], params["bf"], params["wt"], params["bt"]
    B, C, F, T = x_nchw.shape
    hp = jax.lax.Precision.HIGHEST
    cf = jnp.mean(x_nchw, axis=3)                  # (B, C, F)
    ct = jnp.mean(x_nchw, axis=2)                  # (B, C, T)
    g_cat = jnp.concatenate([cf, ct], axis=2)      # (B, C, F+T)
    h = jnp.einsum("bcn,cd->bdn", g_cat, wj, precision=hp)
    h = h * scale[0][None, :, None] + bias[0][None, :, None]
    h = _hardswish(h)                              # (B, Cd, F+T)
    h_c = jnp.mean(h, axis=2, keepdims=True)[:, :, :, None]       # (B, Cd, 1, 1)
    h_cf, h_ct = h[:, :, :F], h[:, :, F:]
    g_cf = jnp.einsum("bcn,ce->ben", h_cf, wf, precision=hp) + bf[0][None, :, None]
    g_ct = jnp.einsum("bcn,ce->ben", h_ct, wt, precision=hp) + bt[0][None, :, None]
    return h_c, g_cf[:, :, :, None], g_ct[:, :, None, :]


def make_params(key, in_ch, context_dim, exp_ch):
    ks = jax.random.split(key, 8)
    # joint_conv: Conv2d(in_ch, context_dim, 1, bias=False) -> (C_in, Cd)
    wj = jax.random.normal(ks[0], (in_ch, context_dim), jnp.float32) * 0.1
    # joint_norm: BatchNorm2d(context_dim), eval mode, folded to scale/bias
    gamma = 1.0 + 0.1 * jax.random.normal(ks[1], (context_dim,), jnp.float32)
    beta = 0.1 * jax.random.normal(ks[2], (context_dim,), jnp.float32)
    run_mean = 0.05 * jax.random.normal(ks[3], (context_dim,), jnp.float32)
    run_var = jnp.abs(1.0 + 0.1 * jax.random.normal(ks[4], (context_dim,), jnp.float32))
    eps = 1e-5
    scale = gamma / jnp.sqrt(run_var + eps)
    bias = beta - run_mean * scale
    # conv_f / conv_t: Conv2d(context_dim, exp_ch, 1, bias=True)
    wf = jax.random.normal(ks[5], (context_dim, exp_ch), jnp.float32) * 0.1
    bf = 0.1 * jax.random.normal(ks[6], (exp_ch,), jnp.float32)
    wt = jax.random.normal(ks[7], (context_dim, exp_ch), jnp.float32) * 0.1
    bt = 0.05 * jnp.ones((exp_ch,), jnp.float32)
    return {
        "wj": wj,
        "scale": scale.reshape(1, context_dim),
        "bias": bias.reshape(1, context_dim),
        "wf": wf, "bf": bf.reshape(1, exp_ch),
        "wt": wt, "bt": bt.reshape(1, exp_ch),
    }


if __name__ == "__main__":
    key = jax.random.PRNGKey(0)
    k1, k2, k3, k4 = jax.random.split(key, 4)

    # Case 1: small shapes, single T tile.
    B, C_in, F, T = 2, 8, 16, 16
    context_dim, exp_ch = 32, 64
    x = jax.random.normal(k1, (B, C_in, F, T), jnp.float32)
    params = make_params(k2, C_in, context_dim, exp_ch)

    fn = jax.jit(functools.partial(context_gen_pallas, stride=1))
    h_c, g_cf, g_ct = fn(x, params)
    jax.block_until_ready((h_c, g_cf, g_ct))

    r_hc, r_gcf, r_gct = context_gen_reference(x, params)
    assert h_c.shape == (B, context_dim, 1, 1)
    assert g_cf.shape == (B, exp_ch, F, 1)
    assert g_ct.shape == (B, exp_ch, 1, T)
    assert jnp.allclose(h_c, r_hc, atol=5e-3, rtol=5e-3)
    assert jnp.allclose(g_cf, r_gcf, atol=5e-3, rtol=5e-3)
    assert jnp.allclose(g_ct, r_gct, atol=5e-3, rtol=5e-3)

    # Case 2: exercise the T-tiled ("arbitrary" axis) accumulation path.
    B2, C2, F2, T2 = 2, 4, 8, 256
    Cd2, E2 = 16, 32
    x2 = jax.random.normal(k3, (B2, C2, F2, T2), jnp.float32)
    params2 = make_params(k4, C2, Cd2, E2)

    fn2 = jax.jit(functools.partial(context_gen_pallas, stride=1, t_tile=128))
    h_c2, g_cf2, g_ct2 = fn2(x2, params2)
    jax.block_until_ready((h_c2, g_cf2, g_ct2))

    r_hc2, r_gcf2, r_gct2 = context_gen_reference(x2, params2)
    assert jnp.allclose(h_c2, r_hc2, atol=5e-3, rtol=5e-3)
    assert jnp.allclose(g_cf2, r_gcf2, atol=5e-3, rtol=5e-3)
    assert jnp.allclose(g_ct2, r_gct2, atol=5e-3, rtol=5e-3)

    print("KERNEL_OK")
</pallas_src>

<mosaic_0001>
module attributes {stable_mosaic.version = 11 : i64} {
  func.func @_context_gen_kernel(%arg0: i32, %arg1: i32, %arg2: memref<1x8x16x16xf32, #tpu.memory_space<vmem>>, %arg3: memref<32x8xf32, #tpu.memory_space<vmem>>, %arg4: memref<32x1xf32, #tpu.memory_space<vmem>>, %arg5: memref<64x32xf32, #tpu.memory_space<vmem>>, %arg6: memref<64x1xf32, #tpu.memory_space<vmem>>, %arg7: memref<64x32xf32, #tpu.memory_space<vmem>>, %arg8: memref<64x1xf32, #tpu.memory_space<vmem>>, %arg9: memref<1x32x1xf32, #tpu.memory_space<vmem>>, %arg10: memref<1x64x16xf32, #tpu.memory_space<vmem>>, %arg11: memref<1x64x16xf32, #tpu.memory_space<vmem>>, %arg12: memref<1x8x16xf32, #tpu.memory_space<vmem>>, %arg13: memref<1x32x1xf32, #tpu.memory_space<vmem>>) attributes {dimension_semantics = [#tpu.dimension_semantics<parallel>, #tpu.dimension_semantics<arbitrary>], iteration_bounds = array<i64: 2, 1>, scalar_prefetch = 0 : i64, scratch_operands = 2 : i64, tpu.core_type = #tpu.core_type<tc>, window_params = [{transform_indices = @transform_0, window_bounds = array<i64: 1, 8, 16, 16>}, {pipeline_mode = #tpu.pipeline_mode<synchronous>, transform_indices = @transform_1, window_bounds = array<i64: 32, 8>}, {pipeline_mode = #tpu.pipeline_mode<synchronous>, transform_indices = @transform_2, window_bounds = array<i64: 32, 1>}, {pipeline_mode = #tpu.pipeline_mode<synchronous>, transform_indices = @transform_3, window_bounds = array<i64: 64, 32>}, {pipeline_mode = #tpu.pipeline_mode<synchronous>, transform_indices = @transform_4, window_bounds = array<i64: 64, 1>}, {pipeline_mode = #tpu.pipeline_mode<synchronous>, transform_indices = @transform_5, window_bounds = array<i64: 64, 32>}, {pipeline_mode = #tpu.pipeline_mode<synchronous>, transform_indices = @transform_6, window_bounds = array<i64: 64, 1>}, {transform_indices = @transform_7, window_bounds = array<i64: 1, 32, 1>}, {transform_indices = @transform_8, window_bounds = array<i64: 1, 64, 16>}, {transform_indices = @transform_9, window_bounds = array<i64: 1, 64, 16>}]} {
    %c0 = arith.constant 0 : index
    %c0_0 = arith.constant 0 : index
    %c0_1 = arith.constant 0 : index
    %c0_2 = arith.constant 0 : index
    %0 = vector.load %arg2[%c0, %c0_0, %c0_1, %c0_2] : memref<1x8x16x16xf32, #tpu.memory_space<vmem>>, vector<1x8x16x16xf32>
    %c0_i32 = arith.constant 0 : i32
    %1 = arith.cmpi eq, %arg1, %c0_i32 : i32
    %2 = arith.extui %1 : i1 to i32
    %c0_i32_3 = arith.constant 0 : i32
    %3 = arith.cmpi ne, %2, %c0_i32_3 : i32
    scf.if %3 {
      %cst_39 = arith.constant 0.000000e+00 : f32
      %45 = vector.broadcast %cst_39 : f32 to vector<1x8x16xf32>
      %c0_40 = arith.constant 0 : index
      %c0_41 = arith.constant 0 : index
      %c0_42 = arith.constant 0 : index
      %46 = vector.load %arg12[%c0_40, %c0_41, %c0_42] : memref<1x8x16xf32, #tpu.memory_space<vmem>>, vector<1x8x16xf32>
      tpu.vector_store %arg12[%c0_40, %c0_41, %c0_42], %45 {strides = array<i32>} : memref<1x8x16xf32, #tpu.memory_space<vmem>>, vector<1x8x16xf32>,
      %cst_43 = arith.constant 0.000000e+00 : f32
      %47 = vector.broadcast %cst_43 : f32 to vector<1x32x1xf32>
      %c0_44 = arith.constant 0 : index
      %c0_45 = arith.constant 0 : index
      %c0_46 = arith.constant 0 : index
      %48 = vector.load %arg13[%c0_44, %c0_45, %c0_46] : memref<1x32x1xf32, #tpu.memory_space<vmem>>, vector<1x32x1xf32>
      tpu.vector_store %arg13[%c0_44, %c0_45, %c0_46], %47 {strides = array<i32>} : memref<1x32x1xf32, #tpu.memory_space<vmem>>, vector<1x32x1xf32>,
    } else {
    }
    %c0_4 = arith.constant 0 : index
    %c0_5 = arith.constant 0 : index
    %c0_6 = arith.constant 0 : index
    %4 = vector.load %arg12[%c0_4, %c0_5, %c0_6] : memref<1x8x16xf32, #tpu.memory_space<vmem>>, vector<1x8x16xf32>
    %cst = arith.constant dense<0.000000e+00> : vector<1x8x16xf32>
    %5 = vector.multi_reduction <add>, %0, %cst [3] : vector<1x8x16x16xf32> to vector<1x8x16xf32>
    %cst_7 = arith.constant 6.250000e-02 : f32
    %6 = vector.broadcast %cst_7 : f32 to vector<1x8x16xf32>
    %7 = arith.mulf %5, %6 : vector<1x8x16xf32>
    %8 = arith.addf %4, %7 : vector<1x8x16xf32>
    %c0_8 = arith.constant 0 : index
    %c0_9 = arith.constant 0 : index
    %c0_10 = arith.constant 0 : index
    %9 = vector.load %arg12[%c0_8, %c0_9, %c0_10] : memref<1x8x16xf32, #tpu.memory_space<vmem>>, vector<1x8x16xf32>
    tpu.vector_store %arg12[%c0_8, %c0_9, %c0_10], %8 {strides = array<i32>} : memref<1x8x16xf32, #tpu.memory_space<vmem>>, vector<1x8x16xf32>,
    %cst_11 = arith.constant dense<0.000000e+00> : vector<1x8x16xf32>
    %10 = vector.multi_reduction <add>, %0, %cst_11 [2] : vector<1x8x16x16xf32> to vector<1x8x16xf32>
    %cst_12 = arith.constant 1.600000e+01 : f32
    %11 = vector.broadcast %cst_12 : f32 to vector<1x8x16xf32>
    %12 = arith.divf %10, %11 : vector<1x8x16xf32>
    %c0_13 = arith.constant 0 : index
    %c0_14 = arith.constant 0 : index
    %13 = vector.load %arg3[%c0_13, %c0_14] : memref<32x8xf32, #tpu.memory_space<vmem>>, vector<32x8xf32>
    %14 = vector.shape_cast %13 : vector<32x8xf32> to vector<1x32x8xf32>
    "tpu.trace_start"() <{level = 10 : i32, message = "bdc,bct->bdt"}> : () -> ()
    %cst_15 = arith.constant dense<0.000000e+00> : vector<1x32x16xf32>
    %15 = tpu.matmul %14, %12, %cst_15 {dimension_numbers = #tpu.dot_dimension_numbers<[2], [1], [1], [2], [0, 0, 0, 1, 1, 2], [0], [0]>} : vector<1x32x8xf32>, vector<1x8x16xf32>, vector<1x32x16xf32> -> vector<1x32x16xf32>
    "tpu.trace_stop"() : () -> ()
    %c0_16 = arith.constant 0 : index
    %c0_17 = arith.constant 0 : index
    %16 = vector.load %arg4[%c0_16, %c0_17] : memref<32x1xf32, #tpu.memory_space<vmem>>, vector<32x1xf32>
    %17 = vector.shape_cast %16 : vector<32x1xf32> to vector<1x32x1xf32>
    %18 = vector.broadcast %17 : vector<1x32x1xf32> to vector<1x32x16xf32>
    %19 = arith.addf %15, %18 : vector<1x32x16xf32>
    %cst_18 = arith.constant 3.000000e+00 : f32
    %20 = vector.broadcast %cst_18 : f32 to vector<1x32x16xf32>
    %21 = arith.addf %19, %20 : vector<1x32x16xf32>
    %cst_19 = arith.constant 0.000000e+00 : f32
    %cst_20 = arith.constant 6.000000e+00 : f32
    %22 = vector.broadcast %cst_19 : f32 to vector<1x32x16xf32>
    %23 = arith.maximumf %22, %21 : vector<1x32x16xf32>
    %24 = vector.broadcast %cst_20 : f32 to vector<1x32x16xf32>
    %25 = arith.minimumf %24, %23 : vector<1x32x16xf32>
    %26 = arith.mulf %19, %25 : vector<1x32x16xf32>
    %cst_21 = arith.constant 0.166666672 : f32
    %27 = vector.broadcast %cst_21 : f32 to vector<1x32x16xf32>
    %28 = arith.mulf %26, %27 : vector<1x32x16xf32>
    %c0_22 = arith.constant 0 : index
    %c0_23 = arith.constant 0 : index
    %c0_24 = arith.constant 0 : index
    %29 = vector.load %arg13[%c0_22, %c0_23, %c0_24] : memref<1x32x1xf32, #tpu.memory_space<vmem>>, vector<1x32x1xf32>
    %cst_25 = arith.constant dense<0.000000e+00> : vector<1x32xf32>
    %30 = vector.multi_reduction <add>, %28, %cst_25 [2] : vector<1x32x16xf32> to vector<1x32xf32>
    %31 = vector.shape_cast %30 : vector<1x32xf32> to vector<1x32x1xf32>
    %32 = arith.addf %29, %31 : vector<1x32x1xf32>
    %c0_26 = arith.constant 0 : index
    %c0_27 = arith.constant 0 : index
    %c0_28 = arith.constant 0 : index
    %33 = vector.load %arg13[%c0_26, %c0_27, %c0_28] : memref<1x32x1xf32, #tpu.memory_space<vmem>>, vector<1x32x1xf32>
    tpu.vector_store %arg13[%c0_26, %c0_27, %c0_28], %32 {strides = array<i32>} : memref<1x32x1xf32, #tpu.memory_space<vmem>>, vector<1x32x1xf32>,
    %c0_29 = arith.constant 0 : index
    %c0_30 = arith.constant 0 : index
    %34 = vector.load %arg7[%c0_29, %c0_30] : memref<64x32xf32, #tpu.memory_space<vmem>>, vector<64x32xf32>
    %35 = vector.shape_cast %34 : vector<64x32xf32> to vector<1x64x32xf32>
    "tpu.trace_start"() <{level = 10 : i32, message = "bed,bdt->bet"}> : () -> ()
    %cst_31 = arith.constant dense<0.000000e+00> : vector<1x64x16xf32>
    %36 = tpu.matmul %35, %28, %cst_31 {dimension_numbers = #tpu.dot_dimension_numbers<[2], [1], [1], [2], [0, 0, 0, 1, 1, 2], [0], [0]>} : vector<1x64x32xf32>, vector<1x32x16xf32>, vector<1x64x16xf32> -> vector<1x64x16xf32>
    "tpu.trace_stop"() : () -> ()
    %c0_32 = arith.constant 0 : index
    %c0_33 = arith.constant 0 : index
    %37 = vector.load %arg8[%c0_32, %c0_33] : memref<64x1xf32, #tpu.memory_space<vmem>>, vector<64x1xf32>
    %38 = vector.shape_cast %37 : vector<64x1xf32> to vector<1x64x1xf32>
    %39 = vector.broadcast %38 : vector<1x64x1xf32> to vector<1x64x16xf32>
    %40 = arith.addf %36, %39 : vector<1x64x16xf32>
    %c0_34 = arith.constant 0 : index
    %c0_35 = arith.constant 0 : index
    %c0_36 = arith.constant 0 : index
    %41 = vector.load %arg11[%c0_34, %c0_35, %c0_36] : memref<1x64x16xf32, #tpu.memory_space<vmem>>, vector<1x64x16xf32>
    tpu.vector_store %arg11[%c0_34, %c0_35, %c0_36], %40 {strides = array<i32>} : memref<1x64x16xf32, #tpu.memory_space<vmem>>, vector<1x64x16xf32>,
    %c0_i32_37 = arith.constant 0 : i32
    %42 = arith.cmpi eq, %arg1, %c0_i32_37 : i32
    %43 = arith.extui %42 : i1 to i32
    %c0_i32_38 = arith.constant 0 : i32
    %44 = arith.cmpi ne, %43, %c0_i32_38 : i32
    scf.if %44 {
      %c0_39 = arith.constant 0 : index
      %c0_40 = arith.constant 0 : index
      %c0_41 = arith.constant 0 : index
      %45 = vector.load %arg12[%c0_39, %c0_40, %c0_41] : memref<1x8x16xf32, #tpu.memory_space<vmem>>, vector<1x8x16xf32>
      "tpu.trace_start"() <{level = 10 : i32, message = "bdc,bcf->bdf"}> : () -> ()
      %cst_42 = arith.constant dense<0.000000e+00> : vector<1x32x16xf32>
      %46 = tpu.matmul %14, %45, %cst_42 {dimension_numbers = #tpu.dot_dimension_numbers<[2], [1], [1], [2], [0, 0, 0, 1, 1, 2], [0], [0]>} : vector<1x32x8xf32>, vector<1x8x16xf32>, vector<1x32x16xf32> -> vector<1x32x16xf32>
      "tpu.trace_stop"() : () -> ()
      %c0_43 = arith.constant 0 : index
      %c0_44 = arith.constant 0 : index
      %47 = vector.load %arg4[%c0_43, %c0_44] : memref<32x1xf32, #tpu.memory_space<vmem>>, vector<32x1xf32>
      %48 = vector.shape_cast %47 : vector<32x1xf32> to vector<1x32x1xf32>
      %49 = vector.broadcast %48 : vector<1x32x1xf32> to vector<1x32x16xf32>
      %50 = arith.addf %46, %49 : vector<1x32x16xf32>
      %cst_45 = arith.constant 3.000000e+00 : f32
      %51 = vector.broadcast %cst_45 : f32 to vector<1x32x16xf32>
      %52 = arith.addf %50, %51 : vector<1x32x16xf32>
      %cst_46 = arith.constant 0.000000e+00 : f32
      %cst_47 = arith.constant 6.000000e+00 : f32
      %53 = vector.broadcast %cst_46 : f32 to vector<1x32x16xf32>
      %54 = arith.maximumf %53, %52 : vector<1x32x16xf32>
      %55 = vector.broadcast %cst_47 : f32 to vector<1x32x16xf32>
      %56 = arith.minimumf %55, %54 : vector<1x32x16xf32>
      %57 = arith.mulf %50, %56 : vector<1x32x16xf32>
      %cst_48 = arith.constant 0.166666672 : f32
      %58 = vector.broadcast %cst_48 : f32 to vector<1x32x16xf32>
      %59 = arith.mulf %57, %58 : vector<1x32x16xf32>
      %c0_49 = arith.constant 0 : index
      %c0_50 = arith.constant 0 : index
      %60 = vector.load %arg5[%c0_49, %c0_50] : memref<64x32xf32, #tpu.memory_space<vmem>>, vector<64x32xf32>
      %61 = vector.shape_cast %60 : vector<64x32xf32> to vector<1x64x32xf32>
      "tpu.trace_start"() <{level = 10 : i32, message = "bed,bdf->bef"}> : () -> ()
      %cst_51 = arith.constant dense<0.000000e+00> : vector<1x64x16xf32>
      %62 = tpu.matmul %61, %59, %cst_51 {dimension_numbers = #tpu.dot_dimension_numbers<[2], [1], [1], [2], [0, 0, 0, 1, 1, 2], [0], [0]>} : vector<1x64x32xf32>, vector<1x32x16xf32>, vector<1x64x16xf32> -> vector<1x64x16xf32>
      "tpu.trace_stop"() : () -> ()
      %c0_52 = arith.constant 0 : index
      %c0_53 = arith.constant 0 : index
      %63 = vector.load %arg6[%c0_52, %c0_53] : memref<64x1xf32, #tpu.memory_space<vmem>>, vector<64x1xf32>
      %64 = vector.shape_cast %63 : vector<64x1xf32> to vector<1x64x1xf32>
      %65 = vector.broadcast %64 : vector<1x64x1xf32> to vector<1x64x16xf32>
      %66 = arith.addf %62, %65 : vector<1x64x16xf32>
      %c0_54 = arith.constant 0 : index
      %c0_55 = arith.constant 0 : index
      %c0_56 = arith.constant 0 : index
      %67 = vector.load %arg10[%c0_54, %c0_55, %c0_56] : memref<1x64x16xf32, #tpu.memory_space<vmem>>, vector<1x64x16xf32>
      tpu.vector_store %arg10[%c0_54, %c0_55, %c0_56], %66 {strides = array<i32>} : memref<1x64x16xf32, #tpu.memory_space<vmem>>, vector<1x64x16xf32>,
      %cst_57 = arith.constant dense<0.000000e+00> : vector<1x32xf32>
      %68 = vector.multi_reduction <add>, %59, %cst_57 [2] : vector<1x32x16xf32> to vector<1x32xf32>
      %69 = vector.shape_cast %68 : vector<1x32xf32> to vector<1x32x1xf32>
      %c0_58 = arith.constant 0 : index
      %c0_59 = arith.constant 0 : index
      %c0_60 = arith.constant 0 : index
      %70 = vector.load %arg13[%c0_58, %c0_59, %c0_60] : memref<1x32x1xf32, #tpu.memory_space<vmem>>, vector<1x32x1xf32>
      %71 = arith.addf %69, %70 : vector<1x32x1xf32>
      %cst_61 = arith.constant 3.125000e-02 : f32
      %72 = vector.broadcast %cst_61 : f32 to vector<1x32x1xf32>
      %73 = arith.mulf %71, %72 : vector<1x32x1xf32>
      %c0_62 = arith.constant 0 : index
      %c0_63 = arith.constant 0 : index
      %c0_64 = arith.constant 0 : index
      %74 = vector.load %arg9[%c0_62, %c0_63, %c0_64] : memref<1x32x1xf32, #tpu.memory_space<vmem>>, vector<1x32x1xf32>
      tpu.vector_store %arg9[%c0_62, %c0_63, %c0_64], %73 {strides = array<i32>} : memref<1x32x1xf32, #tpu.memory_space<vmem>>, vector<1x32x1xf32>,
    } else {
    }
    return
  }
  func.func @transform_0(%arg0: i32, %arg1: i32) -> (i32, i32, i32, i32) {
    %c0_i32 = arith.constant 0 : i32
    %c0_i32_0 = arith.constant 0 : i32
    %c0_i32_1 = arith.constant 0 : i32
    return %arg0, %c0_i32, %c0_i32_0, %arg1 : i32, i32, i32, i32
  }
  func.func @transform_1(%arg0: i32, %arg1: i32) -> (i32, i32) {
    %c0_i32 = arith.constant 0 : i32
    %c0_i32_0 = arith.constant 0 : i32
    %c0_i32_1 = arith.constant 0 : i32
    return %c0_i32, %c0_i32_0 : i32, i32
  }
  func.func @transform_2(%arg0: i32, %arg1: i32) -> (i32, i32) {
    %c0_i32 = arith.constant 0 : i32
    %c0_i32_0 = arith.constant 0 : i32
    %c0_i32_1 = arith.constant 0 : i32
    return %c0_i32, %c0_i32_0 : i32, i32
  }
  func.func @transform_3(%arg0: i32, %arg1: i32) -> (i32, i32) {
    %c0_i32 = arith.constant 0 : i32
    %c0_i32_0 = arith.constant 0 : i32
    %c0_i32_1 = arith.constant 0 : i32
    return %c0_i32, %c0_i32_0 : i32, i32
  }
  func.func @transform_4(%arg0: i32, %arg1: i32) -> (i32, i32) {
    %c0_i32 = arith.constant 0 : i32
    %c0_i32_0 = arith.constant 0 : i32
    %c0_i32_1 = arith.constant 0 : i32
    return %c0_i32, %c0_i32_0 : i32, i32
  }
  func.func @transform_5(%arg0: i32, %arg1: i32) -> (i32, i32) {
    %c0_i32 = arith.constant 0 : i32
    %c0_i32_0 = arith.constant 0 : i32
    %c0_i32_1 = arith.constant 0 : i32
    return %c0_i32, %c0_i32_0 : i32, i32
  }
  func.func @transform_6(%arg0: i32, %arg1: i32) -> (i32, i32) {
    %c0_i32 = arith.constant 0 : i32
    %c0_i32_0 = arith.constant 0 : i32
    %c0_i32_1 = arith.constant 0 : i32
    return %c0_i32, %c0_i32_0 : i32, i32
  }
  func.func @transform_7(%arg0: i32, %arg1: i32) -> (i32, i32, i32) {
    %c0_i32 = arith.constant 0 : i32
    %c0_i32_0 = arith.constant 0 : i32
    %c0_i32_1 = arith.constant 0 : i32
    return %arg0, %c0_i32, %c0_i32_0 : i32, i32, i32
  }
  func.func @transform_8(%arg0: i32, %arg1: i32) -> (i32, i32, i32) {
    %c0_i32 = arith.constant 0 : i32
    %c0_i32_0 = arith.constant 0 : i32
    %c0_i32_1 = arith.constant 0 : i32
    return %arg0, %c0_i32, %c0_i32_0 : i32, i32, i32
  }
  func.func @transform_9(%arg0: i32, %arg1: i32) -> (i32, i32, i32) {
    %c0_i32 = arith.constant 0 : i32
    %c0_i32_0 = arith.constant 0 : i32
    return %arg0, %c0_i32, %arg1 : i32, i32, i32
  }
}

</mosaic_0001>

<bundles_post_ra>
// kernel: context_gen_pallas.1
= control target key start
LH: loop header
LB: loop body
LE: loop exit
PB: predicated region body
PF: predicated region fallthrough
CT: control target
= control target key end

     0   :  { %s1777_s30 = smov 0   ;;  %s1779_s10 = smov 0   ;;  %s2163_s0 = inlined_call_operand.vmem [shape: f32[2,8,16,16], index: 0, kind: input, shape index: {}]   ;;  %s2164_s1 = inlined_call_operand.vmem [shape: f32[32,8], index: 1, kind: input, shape index: {}]   ;;  %s2165_s2 = inlined_call_operand.vmem [shape: f32[32,1], index: 2, kind: input, shape index: {}]   ;;  %s2166_s3 = inlined_call_operand.vmem [shape: f32[64,32], index: 3, kind: input, shape index: {}]   ;;  %s2167_s4 = inlined_call_operand.vmem [shape: f32[64,1], index: 4, kind: input, shape index: {}]   ;;  %s2168_s5 = inlined_call_operand.vmem [shape: f32[64,32], index: 5, kind: input, shape index: {}]   ;;  %s2169_s6 = inlined_call_operand.vmem [shape: f32[64,1], index: 6, kind: input, shape index: {}]   ;;  %s2170_s7 = inlined_call_operand.vmem [shape: f32[2,32,1], index: 7, kind: output, shape index: {0}]   ;;  %s2171_s8 = inlined_call_operand.vmem [shape: f32[2,64,16], index: 8, kind: output, shape index: {1}]   ;;  %s2172_s9 = inlined_call_operand.vmem [shape: f32[2,64,16], index: 9, kind: output, shape index: {2}]  }
   0x1   :  { %s1781_s11 = smov 0  }
   0x2 LB: > { %s32_s12 = sadd.s32 1, %s1719_s10  ;;  %p1544_p0 = scmp.ge.s32.totalorder %s1723_s11, 1  ;;  %s1723_s11 = sphi %s1781_s11, %s20_s11   ;;  %s1719_s10 = sphi %s1779_s10, %s2174_s10   ;;  %s1715_s30 = sphi %s1777_s30, %s2173_s30  }
   0x3   : > { %p34_p1 = scmp.ge.s32.totalorder %s32_s12, 2  ;;  %p311_p2 = scmp.lt.s32.totalorder %s1723_s11, 3 }
   0x5   : > { %s2176_s12 = smov (%p34_p1, %s32_s12), 0  ;;  %p312_p3 = pnand %p1544_p0, %p311_p2 }
   0x6   : > { %p363_p4 = scmp.lt.s32.totalorder (!%p312_p3), %s1715_s30, 1 }
   0x7   : > { %315 = sbr.rel (%p312_p3) target bundleno = 629 (0x275), region = 48 }
   0xc   : > { %v656_v0 = vld [vmem:[%s2164_s1] sm:$0xff]  ;;  %s2178_s30 = smov (!%p363_p4, %s1715_s30), 1  ;;  %vm700_vm0 = vcmask 64512   ;;  %v1725_v1 = vmov 0   ;;  %vm409_vm1 = vcmask 130048   ;;  %vm574_vm2 = vcmask 1041409  }
   0xd   : > { %1619 = vmatprep.mubr.msk.f32.mxu1 %vm700_vm0, %v656_v0  ;;  %1700 = vset.pattern.permute.xlu1 %v1725_v1  ;;  %s1579_s15 = sshll.u32 %s2178_s30, 7  ;;  %vm576_vm3 = vcmask 1042434   ;;  %vm578_vm4 = vcmask 1043459   ;;  %vm580_vm5 = vcmask 1044484   ;;  %vm582_vm6 = vcmask 1045509   ;;  %s1581_s29 = sshll.u32 %s2178_s30, 6 }
   0xe   : > { %1699 = vset.pattern.permute.xlu0 %v1725_v1  ;;  %1647 = vmatprep.mubr.msk.f32.mxu0 %vm700_vm0, %v656_v0  ;;  %s1806_s18 = scalar_lea.vmem %s2163_s0, %s1579_s15  ;;  %vm584_vm7 = vcmask 1046534   ;;  %vm586_vm8 = vcmask 1047559   ;;  %vm899_vm9 = vcmask 261120   ;;  %vm509_vm10 = vcmask 130112   ;;  %s388_s15 = scalar_lea.vmem %s2172_s9, %s1581_s29 }
   0xf   : > { %v391_v2 = vld [vmem:[%s1806_s18 + $0x10] sm:$0xff]  ;;  %v389_v3 = vld [vmem:[%s1806_s18] sm:$0xff]  ;;  %v392_v4 = vld [vmem:[%s1806_s18 + $0x18] sm:$0xff]  ;;  %vm411_vm11 = vcmask 7168   ;;  %s1580_s16 = sshll.u32 %s2178_s30, 5  ;;  %s380_s22 = scalar_lea.vmem %s2171_s8, %s1581_s29 }
  0x10   : > { %v424_v5 = vsel %vm409_vm1, %v391_v2, 0.0  ;;  %v418_v6 = vsel %vm409_vm1, %v389_v3, 0.0  ;;  %v427_v7 = vsel %vm409_vm1, %v392_v4, 0.0  ;;  %v390_v8 = vld [vmem:[%s1806_s18 + $0x8] sm:$0xff]  ;;  %v393_v10 = vld [vmem:[%s1806_s18 + $0x20] sm:$0xff]  ;;  %v396_v15 = vld [vmem:[%s1806_s18 + $0x38] sm:$0xff]  ;;  %s375_s19 = scalar_lea.vmem %s2170_s7, %s1580_s16 }
  0x11   : > { %v394_v9 = vld [vmem:[%s1806_s18 + $0x28] sm:$0xff]  ;;  %425 = vadd.xlane.f32.xlu1 %v424_v5  ;;  %419 = vadd.xlane.f32.xlu0 %v418_v6  ;;  %v598_v11 = vadd.f32 %v427_v7, %v424_v5  ;;  %v421_v12 = vsel %vm409_vm1, %v390_v8, 0.0  ;;  %v430_v14 = vsel %vm409_vm1, %v393_v10, 0.0  ;;  %v395_v16 = vld [vmem:[%s1806_s18 + $0x30] sm:$0xff]  ;;  %v439_v20 = vsel %vm409_vm1, %v396_v15, 0.0  ;;  %v397_v22 = vld [vmem:[%s1806_s18 + $0x40] sm:$0xff] }
  0x12   : > { %v433_v13 = vsel %vm409_vm1, %v394_v9, 0.0  ;;  %v398_v17 = vld [vmem:[%s1806_s18 + $0x48] sm:$0xff]  ;;  %v591_v18 = vadd.f32 %v421_v12, %v418_v6  ;;  %v436_v21 = vsel %vm409_vm1, %v395_v16, 0.0  ;;  %v400_v23 = vld [vmem:[%s1806_s18 + $0x58] sm:$0xff]  ;;  %v399_v24 = vld [vmem:[%s1806_s18 + $0x50] sm:$0xff]  ;;  %v1832_v28 = vsel %vm409_vm1, %v397_v22, 0.0 }
  0x13   : > { %v605_v19 = vadd.f32 %v433_v13, %v430_v14  ;;  %v599_v25 = vrot.slane %v598_v11, 4  ;;  %v612_v26 = vadd.f32 %v439_v20, %v436_v21  ;;  %v1829_v27 = vsel %vm409_vm1, %v398_v17, 0.0  ;;  %v401_v29 = vld [vmem:[%s1806_s18 + $0x60] sm:$0xff]  ;;  %v402_v34 = vld [vmem:[%s1806_s18 + $0x68] sm:$0xff]  ;;  %v403_v35 = vld [vmem:[%s1806_s18 + $0x70] sm:$0xff] }
  0x14   : > { %v592_v30 = vrot.slane %v591_v18, 4  ;;  %v619_v32 = vadd.f32 %v1829_v27, %v1832_v28  ;;  %v1838_v33 = vsel %vm409_vm1, %v400_v23, 0.0  ;;  %v1843_v38 = vsel %vm409_vm1, %v399_v24, 0.0  ;;  %v404_v44 = vld [vmem:[%s1806_s18 + $0x78] sm:$0xff] }
  0x15   : > { %v606_v31 = vrot.slane %v605_v19, 4  ;;  %428 = vadd.xlane.f32.xlu1 %v427_v7  ;;  %v600_v36 = vadd.f32 %v599_v25, %v598_v11  ;;  %422 = vadd.xlane.f32.xlu0 %v421_v12  ;;  %v613_v37 = vrot.slane %v612_v26, 4  ;;  %v1846_v39 = vsel %vm409_vm1, %v401_v29, 0.0 }
  0x16   : > { %v593_v40 = vadd.f32 %v592_v30, %v591_v18  ;;  %v620_v42 = vrot.slane %v619_v32, 4  ;;  %v626_v43 = vadd.f32 %v1838_v33, %v1843_v38  ;;  %v1852_v47 = vsel %vm409_vm1, %v402_v34, 0.0 }
  0x17   : > { %v607_v41 = vadd.f32 %v606_v31, %v605_v19  ;;  %v601_v45 = vrot.slane %v600_v36, 2  ;;  %v614_v46 = vadd.f32 %v613_v37, %v612_v26  ;;  %v1855_v48 = vsel %vm409_vm1, %v403_v35, 0.0 }
  0x18   : > { %v594_v49 = vrot.slane %v593_v40, 2  ;;  %v621_v51 = vadd.f32 %v620_v42, %v619_v32  ;;  %v627_v52 = vrot.slane %v626_v43, 4  ;;  %v1858_v55 = vsel %vm409_vm1, %v404_v44, 0.0 }
  0x19   : > { %v608_v50 = vrot.slane %v607_v41, 2  ;;  %v602_v53 = vadd.f32 %v601_v45, %v600_v36  ;;  %434 = vadd.xlane.f32.xlu1 %v433_v13  ;;  %431 = vadd.xlane.f32.xlu0 %v430_v14  ;;  %v615_v54 = vrot.slane %v614_v46, 2  ;;  %v633_v56 = vadd.f32 %v1852_v47, %v1846_v39  ;;  %v1044_v45 = vld [vmem:[%s2165_s2 + $0x18] sm:$0xff] }
  0x1a   : > { %v595_v57 = vadd.f32 %v594_v49, %v593_v40  ;;  %v622_v59 = vrot.slane %v621_v51, 2  ;;  %v628_v60 = vadd.f32 %v627_v52, %v626_v43  ;;  %v640_v0 = vadd.f32 %v1858_v55, %v1855_v48  ;;  %v1885_v43 = vld [vmem:[%s2164_s1 + $0x10] sm:$0xff]  ;;  %v852_v49 = vld [vmem:[%s2169_s6 + $0x8] sm:$0xff] }
  0x1b   : > { %v609_v58 = vadd.f32 %v608_v50, %v607_v41  ;;  %v603_v61 = vrot.slane %v602_v53, 1  ;;  %v616_v62 = vadd.f32 %v615_v54, %v614_v46  ;;  %v634_v63 = vrot.slane %v633_v56, 4  ;;  %v662_v46 = vld [vmem:[%s2165_s2 + $0x10] sm:$0xff]  ;;  %v856_v52 = vld [vmem:[%s2169_s6 + $0x28] sm:$0xff]  ;;  %v1178_v54 = vld [vmem:[%s2167_s4] sm:$0xff] }
  0x1c   : > { %v596_v1 = vrot.slane %v595_v57, 1  ;;  %v623_v3 = vadd.f32 %v622_v59, %v621_v51  ;;  %v629_v4 = vrot.slane %v628_v60, 2  ;;  %v641_v8 = vrot.slane %v640_v0, 4  ;;  %v853_v50 = vld [vmem:[%s2169_s6 + $0x10] sm:$0xff]  ;;  %v854_v51 = vld [vmem:[%s2169_s6 + $0x18] sm:$0xff]  ;;  %v843_v59 = vld [vmem:[%s2168_s5] sm:$0xff] }
  0x1d   : > { %v610_v2 = vrot.slane %v609_v58, 1  ;;  %v604_v5 = vadd.f32 %v603_v61, %v602_v53  ;;  %440 = vadd.xlane.f32.xlu1 %v439_v20  ;;  %v617_v6 = vrot.slane %v616_v62, 1  ;;  %437 = vadd.xlane.f32.xlu0 %v436_v21  ;;  %v635_v7 = vadd.f32 %v634_v63, %v633_v56  ;;  %v857_v53 = vld [vmem:[%s2169_s6 + $0x30] sm:$0xff]  ;;  %v851_v56 = vld [vmem:[%s2169_s6] sm:$0xff]  ;;  %v1179_v61 = vld [vmem:[%s2167_s4 + $0x8] sm:$0xff] }
  0x1e   : > { %v597_v9 = vadd.f32 %v596_v1, %v595_v57  ;;  %v624_v11 = vrot.slane %v623_v3, 1  ;;  %v630_v12 = vadd.f32 %v629_v4, %v628_v60  ;;  %v642_v16 = vadd.f32 %v641_v8, %v640_v0  ;;  %v1182_v57 = vld [vmem:[%s2167_s4 + $0x20] sm:$0xff]  ;;  %v858_v60 = vld [vmem:[%s2169_s6 + $0x38] sm:$0xff]  ;;  %v1183_v63 = vld [vmem:[%s2167_s4 + $0x28] sm:$0xff] }
  0x1f   : > { %v611_v10 = vadd.f32 %v610_v2, %v609_v58  ;;  %v649_v13 = vmul.f32 0.0625, %v604_v5  ;;  %v618_v14 = vadd.f32 %v617_v6, %v616_v62  ;;  %v636_v15 = vrot.slane %v635_v7, 2  ;;  %v855_v58 = vld [vmem:[%s2169_s6 + $0x20] sm:$0xff]  ;;  %v1181_v62 = vld [vmem:[%s2167_s4 + $0x18] sm:$0xff] }
  0x20   : > { %v648_v17 = vmul.f32 0.0625, %v597_v9  ;;  %v625_v19 = vadd.f32 %v624_v11, %v623_v3  ;;  %v631_v22 = vrot.slane %v630_v12, 1  ;;  %v643_v21 = vrot.slane %v642_v16, 2 }
  0x21   : > { %v650_v18 = vmul.f32 0.0625, %v611_v10  ;;  %v651_v23 = vmul.f32 0.0625, %v618_v14  ;;  %446 = vadd.xlane.f32.xlu1 %v1829_v27  ;;  %443 = vadd.xlane.f32.xlu0 %v1832_v28  ;;  %v637_v20 = vadd.f32 %v636_v15, %v635_v7  ;;  %v1726_v44 = vmov 0.0  }
  0x22   : > { %v692_v24 = vsel %vm574_vm2, %v649_v13, %v648_v17  ;;  %v652_v25 = vmul.f32 0.0625, %v625_v19  ;;  %v632_v26 = vadd.f32 %v631_v22, %v630_v12  ;;  %v644_v30 = vadd.f32 %v643_v21, %v642_v16  ;;  %410 = vst.msk [vmem:[#allocation2] sm:$0xff] %vm409_vm1, %v1726_v44 }
  0x23   : > { %v638_v29 = vrot.slane %v637_v20, 1  ;;  %v693_v31 = vsel %vm576_vm3, %v650_v18, %v692_v24  ;;  %v498_v4 = vlaneseq  ;;  %413 = vst.msk [vmem:[#allocation3 + $0x8] sm:$0xff] %vm411_vm11, %v1726_v44  ;;  %412 = vst.msk [vmem:[#allocation3] sm:$0xff] %vm411_vm11, %v1726_v44 }
  0x24   : > { %v653_v32 = vmul.f32 0.0625, %v632_v26  ;;  %v694_v34 = vsel %vm578_vm4, %v651_v23, %v693_v31  ;;  %v645_v28 = vrot.slane %v644_v30, 1  ;;  %414 = vst.msk [vmem:[#allocation3 + $0x10] sm:$0xff] %vm411_vm11, %v1726_v44  ;;  %415 = vst.msk [vmem:[#allocation3 + $0x18] sm:$0xff] %vm411_vm11, %v1726_v44 }
  0x25   : > { %452 = vadd.xlane.f32.xlu1 %v1838_v33  ;;  %449 = vadd.xlane.f32.xlu0 %v1843_v38  ;;  %v639_v27 = vadd.f32 %v638_v29, %v637_v20  ;;  %v695_v35 = vsel %vm580_vm5, %v652_v25, %v694_v34  ;;  %v1880_v38 = vld [vmem:[%s2164_s1 + $0x8] sm:$0xff]  ;;  %v499_v7 = vand.u32 127, %v498_v4  ;;  %v501_v11 = vshrl.u32 %v498_v4, 7 }
  0x26   : > { %v696_v36 = vsel %vm582_vm6, %v653_v32, %v695_v35  ;;  %v646_v37 = vadd.f32 %v645_v28, %v644_v30 }
  0x27   : > { %v654_v40 = vmul.f32 0.0625, %v639_v27  ;;  %v504_v10 = vadd.s32 4294967288, %v499_v7  ;;  %v502_v17 = vsub.s32 %v499_v7, %v501_v11 }
  0x28   : > { %v655_v41 = vmul.f32 0.0625, %v646_v37 }
  0x29   : > { %v697_v42 = vsel %vm584_vm7, %v654_v40, %v696_v36  ;;  %458 = vadd.xlane.f32.xlu1 %v1852_v47  ;;  %455 = vadd.xlane.f32.xlu0 %v1846_v39  ;;  %v1896_v39 = vld [vmem:[%s2164_s1 + $0x18] sm:$0xff]  ;;  %v661_v47 = vld [vmem:[%s2165_s2 + $0x8] sm:$0xff]  ;;  %v507_v14 = vsub.s32 %v504_v10, %v501_v11 }
  0x2a   : > { %v698_v33 = vsel %vm586_vm8, %v655_v41, %v697_v42 }
  0x2b   : > { %1617 = vmatprep.subr.mxu1 %v698_v33 }
  0x2c   : > { %1618 = vmatpush3.msra.mxu1 %v698_v33 }
  0x2d   : > { %464 = vadd.xlane.f32.xlu1 %v1858_v55  ;;  %1620 = vmatmul.mubr.msk.f32.vlgmr.msra.gmra.mxu1 %vm700_vm0, %v1880_v38  ;;  %v1180_v55 = vld [vmem:[%s2167_s4 + $0x10] sm:$0xff] }
  0x2e   : > { %461 = vadd.xlane.f32.xlu0 %v1855_v48  ;;  %1622 = vmatprep.mubr.msk.f32.mxu1 %vm700_vm0, %v1885_v43  ;;  %v660_v48 = vld [vmem:[%s2165_s2] sm:$0xff] }
  0x31   : > { %1623 = vmatmul.mubr.msk.f32.gmra.mxu1 %vm700_vm0, %v1896_v39 }
  0x32   : > { %1633 = vmatprep.mubr.msk.f32.mxu1 %vm899_vm9, %v843_v59 }
  0x3e   : > { %1062 = vperm.xlu1 %1700, %v1044_v45  }
  0x42   : > { %676 = vperm.xlu1 %1700, %v662_v46  }
  0x44   : > { %681 = vperm.xlu0 %1699, %v1044_v45  }
  0x46   : > { %1057 = vperm.xlu1 %1700, %v662_v46  }
  0x48   : > { %861 = vperm.xlu0 %1699, %v851_v56  }
  0x4a   : > { %671 = vperm.xlu1 %1700, %v661_v47  }
  0x4c   : > { %881 = vperm.xlu0 %1699, %v855_v58  }
  0x4e   : > { %1052 = vperm.xlu1 %1700, %v661_v47  }
  0x50   : > { %896 = vperm.xlu0 %1699, %v858_v60  }
  0x52   : > { %666 = vperm.xlu1 %1700, %v660_v48  }
  0x54   : > { %1193 = vperm.xlu0 %1699, %v1179_v61  }
  0x56   : > { %1047 = vperm.xlu1 %1700, %v660_v48  }
  0x58   : > { %1203 = vperm.xlu0 %1699, %v1181_v62  }
  0x5a   : > { %866 = vperm.xlu1 %1700, %v852_v49  }
  0x5c   : > { %1213 = vperm.xlu0 %1699, %v1183_v63  }
  0x5e   : > { %871 = vperm.xlu1 %1700, %v853_v50  }
  0x62   : > { %876 = vperm.xlu1 %1700, %v854_v51  }
  0x66   : > { %886 = vperm.xlu1 %1700, %v856_v52  }
  0x6a   : > { %891 = vperm.xlu1 %1700, %v857_v53  }
  0x6e   : > { %1188 = vperm.xlu1 %1700, %v1178_v54  }
  0x72   : > { %1198 = vperm.xlu1 %1700, %v1180_v55  }
  0x76   : > { %1208 = vperm.xlu1 %1700, %v1182_v57  }
  0x9a   : > { %v426_v0 = vpop.xlane.xlu1 %425  ;;  %v420_v1 = vpop.xlane.xlu0 %419 }
  0x9b   : > { %v468_v22 = vmul.f32 0.0625, %v426_v0  ;;  %v466_v23 = vmul.f32 0.0625, %v420_v1 }
  0x9d   : > { %v514_v35 = vrot.slane %v468_v22, %v502_v17  ;;  %v503_v36 = vrot.slane %v466_v23, %v502_v17 }
  0x9e   : > { %v429_v2 = vpop.xlane.xlu1 %428  ;;  %v423_v3 = vpop.xlane.xlu0 %422 }
  0x9f   : > { %v469_v15 = vmul.f32 0.0625, %v429_v2  ;;  %v467_v16 = vmul.f32 0.0625, %v423_v3 }
  0xa1   : > { %v518_v30 = vrot.slane %v469_v15, %v507_v14  ;;  %v508_v31 = vrot.slane %v467_v16, %v507_v14 }
  0xa2   : > { %v435_v5 = vpop.xlane.xlu1 %434  ;;  %v432_v6 = vpop.xlane.xlu0 %431 }
  0xa3   : > { %v471_v18 = vmul.f32 0.0625, %v435_v5  ;;  %v470_v19 = vmul.f32 0.0625, %v432_v6  ;;  %v519_v48 = vsel %vm509_vm10, %v518_v30, %v514_v35  ;;  %v510_v49 = vsel %vm509_vm10, %v508_v31, %v503_v36  ;;  %v416_v6 = vld [vmem:[#allocation2] sm:$0xff] }
  0xa4   : > { %v575_v57 = vsel %vm574_vm2, %v519_v48, %v510_v49 }
  0xa5   : > { %v527_v27 = vrot.slane %v471_v18, %v507_v14  ;;  %v523_v28 = vrot.slane %v470_v19, %v502_v17 }
  0xa6   : > { %v441_v8 = vpop.xlane.xlu1 %440  ;;  %v438_v9 = vpop.xlane.xlu0 %437 }
  0xa7   : > { %v473_v20 = vmul.f32 0.0625, %v441_v8  ;;  %v472_v21 = vmul.f32 0.0625, %v438_v9  ;;  %v528_v52 = vsel %vm509_vm10, %v527_v27, %v523_v28 }
  0xa8   : > { %v577_v61 = vsel %vm576_vm3, %v528_v52, %v575_v57  ;;  %v845_v52 = vld [vmem:[%s2168_s5 + $0x10] sm:$0xff]  ;;  %v850_v57 = vld [vmem:[%s2168_s5 + $0x38] sm:$0xff] }
  0xa9   : > { %v536_v37 = vrot.slane %v473_v20, %v507_v14  ;;  %v532_v40 = vrot.slane %v472_v21, %v502_v17 }
  0xaa   : > { %v447_v12 = vpop.xlane.xlu1 %446  ;;  %v444_v13 = vpop.xlane.xlu0 %443 }
  0xab   : > { %v475_v26 = vmul.f32 0.0625, %v447_v12  ;;  %v474_v29 = vmul.f32 0.0625, %v444_v13  ;;  %v537_v55 = vsel %vm509_vm10, %v536_v37, %v532_v40 }
  0xac   : > { %v579_v0 = vsel %vm578_vm4, %v537_v55, %v577_v61  ;;  %v848_v55 = vld [vmem:[%s2168_s5 + $0x28] sm:$0xff] }
  0xad   : > { %v545_v33 = vrot.slane %v475_v26, %v507_v14  ;;  %v541_v45 = vrot.slane %v474_v29, %v502_v17 }
  0xae   : > { %v453_v24 = vpop.xlane.xlu1 %452  ;;  %v450_v25 = vpop.xlane.xlu0 %449 }
  0xaf   : > { %v477_v32 = vmul.f32 0.0625, %v453_v24  ;;  %v476_v34 = vmul.f32 0.0625, %v450_v25  ;;  %v546_v58 = vsel %vm509_vm10, %v545_v33, %v541_v45 }
  0xb0   : > { %v581_v3 = vsel %vm580_vm5, %v546_v58, %v579_v0 }
  0xb1   : > { %v554_v50 = vrot.slane %v477_v32, %v507_v14  ;;  %v550_v51 = vrot.slane %v476_v34, %v502_v17 }
  0xb2   : > { %v459_v41 = vpop.xlane.xlu1 %458  ;;  %v456_v42 = vpop.xlane.xlu0 %455 }
  0xb3   : > { %v479_v46 = vmul.f32 0.0625, %v459_v41  ;;  %v478_v47 = vmul.f32 0.0625, %v456_v42  ;;  %v555_v62 = vsel %vm509_vm10, %v554_v50, %v550_v51  ;;  %v844_v51 = vld [vmem:[%s2168_s5 + $0x8] sm:$0xff] }
  0xb4   : > { %v583_v5 = vsel %vm582_vm6, %v555_v62, %v581_v3 }
  0xb5   : > { %v563_v53 = vrot.slane %v479_v46, %v507_v14  ;;  %v559_v54 = vrot.slane %v478_v47, %v502_v17 }
  0xb6   : > { %v465_v56 = vpop.xlane.xlu1 %464 }
  0xb7   : > { %v481_v59 = vmul.f32 0.0625, %v465_v56  ;;  %v462_v60 = vpop.xlane.xlu0 %461  ;;  %v564_v1 = vsel %vm509_vm10, %v563_v53, %v559_v54  ;;  %v846_v53 = vld [vmem:[%s2168_s5 + $0x18] sm:$0xff]  ;;  %v847_v54 = vld [vmem:[%s2168_s5 + $0x20] sm:$0xff]  ;;  %v849_v56 = vld [vmem:[%s2168_s5 + $0x30] sm:$0xff] }
  0xb8   : > { %v480_v63 = vmul.f32 0.0625, %v462_v60  ;;  %v585_v7 = vsel %vm584_vm7, %v564_v1, %v583_v5 }
  0xb9   : > { %v572_v2 = vrot.slane %v481_v59, %v507_v14  ;;  %v1170_v59 = vld [vmem:[%s2166_s3] sm:$0xff] }
  0xba   : > { %v568_v4 = vrot.slane %v480_v63, %v502_v17  ;;  %v1982_v12 = vpop.permute.xlu1 %1062 }
  0xbc   : > { %v573_v8 = vsel %vm509_vm10, %v572_v2, %v568_v4 }
  0xbd   : > { %v587_v9 = vsel %vm586_vm8, %v573_v8, %v585_v7 }
  0xbe   : > { %v589_v10 = vadd.f32 %v587_v9, %v416_v6  ;;  %v677_v13 = vpop.permute.xlu1 %676 }
  0xbf   : > { %v682_v23 = vpop.permute.xlu0 %681 }
  0xc0   : > { %590 = vst.msk [vmem:[#allocation2] sm:$0xff] %vm409_vm1, %v589_v10  ;;  %v819_v10 = vld [vmem:[#allocation3 + $0x8] sm:$0xff] }
  0xc2   : > { %v1984_v14 = vpop.permute.xlu1 %1057 }
  0xc3   : > { %v2036_v63 = vpop.permute.xlu0 %861 }
  0xc6   : > { %v672_v15 = vpop.permute.xlu1 %671 }
  0xc7   : > { %v1040_v11 = vld [vmem:[#allocation2] sm:$0xff]  ;;  %v2040_v1 = vpop.permute.xlu0 %881 }
  0xc8   : > { %1645 = vmatprep.subr.mxu0 %v1040_v11 }
  0xc9   : > { %1646 = vmatpush3.msra.mxu0 %v1040_v11 }
  0xca   : > { %1648 = vmatmul.mubr.msk.f32.vlgmr.msra.gmra.mxu0 %vm700_vm0, %v1880_v38  ;;  %v1986_v16 = vpop.permute.xlu1 %1052 }
  0xcb   : > { %1650 = vmatprep.mubr.msk.f32.mxu0 %vm700_vm0, %v1885_v43  ;;  %v2044_v3 = vpop.permute.xlu0 %896 }
  0xce   : > { %1651 = vmatmul.mubr.msk.f32.gmra.mxu0 %vm700_vm0, %v1896_v39  ;;  %v667_v18 = vpop.permute.xlu1 %666 }
  0xcf   : > { %1661 = vmatprep.mubr.msk.f32.mxu0 %vm899_vm9, %v1170_v59  ;;  %v2048_v5 = vpop.permute.xlu0 %1193  ;;  %v1184_v59 = vld [vmem:[%s2167_s4 + $0x30] sm:$0xff] }
  0xd2   : > { %v1048_v60 = vpop.permute.xlu1 %1047 }
  0xd3   : > { %v2052_v7 = vpop.permute.xlu0 %1203 }
  0xd6   : > { %v2024_v61 = vpop.permute.xlu1 %866 }
  0xd7   : > { %v2056_v8 = vpop.permute.xlu0 %1213 }
  0xda   : > { %v2034_v62 = vpop.permute.xlu1 %871 }
  0xde   : > { %v2038_v0 = vpop.permute.xlu1 %876 }
  0xe2   : > { %v2042_v2 = vpop.permute.xlu1 %886 }
  0xe6   : > { %v2046_v4 = vpop.permute.xlu1 %891 }
  0xea   : > { %v2050_v6 = vpop.permute.xlu1 %1188 }
  0xed   : > { %v1621_v17 = vpop.f32.mrf.mxu1 }
  0xee   : > { %v785_v19 = vadd.f32 %v1621_v17, %v672_v15  ;;  %v2054_v44 = vpop.permute.xlu1 %1198 }
  0xef   : > { %v779_v22 = vpop.f32.mrf.mxu1 }
  0xf0   : > { %v799_v38 = vadd.f32 3.0, %v785_v19  ;;  %v780_v20 = vadd.f32 %v779_v22, %v667_v18 }
  0xf1   : > { %v1624_v21 = vpop.f32.mrf.mxu1 }
  0xf2   : > { %v803_v43 = vmax.f32 %v799_v38, 0.0  ;;  %v795_v24 = vadd.f32 %v1624_v21, %v682_v23  ;;  %v798_v25 = vadd.f32 3.0, %v780_v20  ;;  %v2058_v9 = vpop.permute.xlu1 %1208 }
  0xf3   : > { %v789_v39 = vpop.f32.mrf.mxu1 }
  0xf4   : > { %v807_v26 = vmin.f32 %v803_v43, 6.0  ;;  %v801_v29 = vadd.f32 3.0, %v795_v24  ;;  %v790_v30 = vadd.f32 %v789_v39, %v677_v13  ;;  %v802_v31 = vmax.f32 %v798_v25, 0.0  ;;  %v818_v13 = vld [vmem:[#allocation3] sm:$0xff] }
  0xf6   : > { %v811_v32 = vmul.f32 %v807_v26, %v785_v19  ;;  %v805_v34 = vmax.f32 %v801_v29, 0.0  ;;  %v800_v27 = vadd.f32 3.0, %v790_v30  ;;  %v806_v28 = vmin.f32 %v802_v31, 6.0  ;;  %v820_v19 = vld [vmem:[#allocation3 + $0x10] sm:$0xff] }
  0xf8   : > { %v815_v35 = vmul.f32 0.16666667, %v811_v32  ;;  %v809_v36 = vmin.f32 %v805_v34, 6.0  ;;  %v804_v37 = vmax.f32 %v800_v27, 0.0  ;;  %v810_v40 = vmul.f32 %v806_v28, %v780_v20 }
  0xfa   : > { %v813_v41 = vmul.f32 %v809_v36, %v795_v24  ;;  %v808_v42 = vmin.f32 %v804_v37, 6.0  ;;  %v814_v33 = vmul.f32 0.16666667, %v810_v40  ;;  %v825_v45 = vsel %vm409_vm1, %v815_v35, 0.0 }
  0xfb   : > { %826 = vadd.xlane.f32.xlu0 %v825_v45 }
  0xfc   : > { %v817_v46 = vmul.f32 0.16666667, %v813_v41  ;;  %v812_v47 = vmul.f32 %v808_v42, %v790_v30  ;;  %v822_v48 = vsel %vm409_vm1, %v814_v33, 0.0 }
  0xfd   : > { %823 = vadd.xlane.f32.xlu1 %v822_v48 }
  0xfe   : > { %v816_v49 = vmul.f32 0.16666667, %v812_v47  ;;  %1625 = vmatprep.subr.mxu1 %v817_v46  ;;  %v831_v58 = vsel %vm409_vm1, %v817_v46, 0.0 }
  0xff   : > { %1626 = vmatpush3.msra.mxu1 %v817_v46 }
 0x100   : > { %1627 = vmatprep.subr.mxu1 %v816_v49  ;;  %v828_v50 = vsel %vm409_vm1, %v816_v49, 0.0 }
 0x101   : > { %1628 = vmatpush3.msra.mxu1 %v816_v49  ;;  %829 = vadd.xlane.f32.xlu0 %v828_v50 }
 0x102   : > { %1629 = vmatprep.subr.mxu1 %v815_v35  ;;  %832 = vadd.xlane.f32.xlu1 %v831_v58  ;;  %v1174_v58 = vld [vmem:[%s2166_s3 + $0x20] sm:$0xff] }
 0x103   : > { %1630 = vmatpush3.msra.mxu1 %v815_v35 }
 0x104   : > { %1631 = vmatprep.subr.mxu1 %v814_v33 }
 0x105   : > { %1632 = vmatpush3.msra.mxu1 %v814_v33 }
 0x106   : > { %1634 = vmatmul.mubr.msk.f32.vlgmr.msra.gmra.mxu1 %vm899_vm9, %v844_v51  ;;  %v821_v51 = vld [vmem:[#allocation3 + $0x18] sm:$0xff] }
 0x107   : > { %1636 = vmatprep.mubr.msk.f32.mxu1 %vm899_vm9, %v845_v52  ;;  %v1171_v52 = vld [vmem:[%s2166_s3 + $0x8] sm:$0xff] }
 0x10a   : > { %1637 = vmatmul.mubr.msk.f32.gmra.mxu1 %vm899_vm9, %v846_v53 }
 0x10b   : > { %1639 = vmatprep.mubr.msk.f32.mxu1 %vm899_vm9, %v847_v54 }
 0x10e   : > { %1640 = vmatmul.mubr.msk.f32.gmra.mxu1 %vm899_vm9, %v848_v55  ;;  %v1172_v55 = vld [vmem:[%s2166_s3 + $0x10] sm:$0xff] }
 0x10f   : > { %1642 = vmatprep.mubr.msk.f32.mxu1 %vm899_vm9, %v849_v56 }
 0x112   : > { %1643 = vmatmul.mubr.msk.f32.gmra.mxu1 %vm899_vm9, %v850_v57  ;;  %v1173_v57 = vld [vmem:[%s2166_s3 + $0x18] sm:$0xff] }
 0x184   : > { %v827_v11 = vpop.xlane.xlu0 %826 }
 0x185   : > { %v835_v15 = vadd.f32 %v827_v11, %v819_v10  ;;  %v1176_v10 = vld [vmem:[%s2166_s3 + $0x30] sm:$0xff]  ;;  %v1177_v11 = vld [vmem:[%s2166_s3 + $0x38] sm:$0xff] }
 0x186   : > { %v824_v17 = vpop.xlane.xlu1 %823 }
 0x187   : > { %840 = vst.msk [vmem:[#allocation3 + $0x8] sm:$0xff] %vm411_vm11, %v835_v15  ;;  %v834_v18 = vadd.f32 %v824_v17, %v818_v13  ;;  %v1185_v13 = vld [vmem:[%s2167_s4 + $0x38] sm:$0xff] }
 0x189   : > { %839 = vst.msk [vmem:[#allocation3] sm:$0xff] %vm411_vm11, %v834_v18 }
 0x18a   : > { %v1649_v22 = vpop.f32.mrf.mxu0  ;;  %v830_v38 = vpop.xlane.xlu0 %829 }
 0x18b   : > { %v1137_v23 = vadd.f32 %v1649_v22, %v1986_v16  ;;  %v836_v21 = vadd.f32 %v830_v38, %v820_v19  ;;  %v833_v53 = vpop.xlane.xlu1 %832 }
 0x18c   : > { %v1131_v20 = vpop.f32.mrf.mxu0  ;;  %v837_v56 = vadd.f32 %v833_v53, %v821_v51 }
 0x18d   : > { %v1151_v43 = vadd.f32 3.0, %v1137_v23  ;;  %v1132_v24 = vadd.f32 %v1131_v20, %v1048_v60  ;;  %841 = vst.msk [vmem:[#allocation3 + $0x10] sm:$0xff] %vm411_vm11, %v836_v21  ;;  %v1175_v60 = vld [vmem:[%s2166_s3 + $0x28] sm:$0xff] }
 0x18e   : > { %v1652_v25 = vpop.f32.mrf.mxu0  ;;  %842 = vst.msk [vmem:[#allocation3 + $0x18] sm:$0xff] %vm411_vm11, %v837_v56 }
 0x18f   : > { %v1155_v39 = vmax.f32 %v1151_v43, 0.0  ;;  %v1150_v26 = vadd.f32 3.0, %v1132_v24  ;;  %v1147_v29 = vadd.f32 %v1652_v25, %v1982_v12 }
 0x190   : > { %v1141_v30 = vpop.f32.mrf.mxu0 }
 0x191   : > { %v1159_v31 = vmin.f32 %v1155_v39, 6.0  ;;  %v1154_v32 = vmax.f32 %v1150_v26, 0.0  ;;  %v1153_v34 = vadd.f32 3.0, %v1147_v29  ;;  %v1142_v27 = vadd.f32 %v1141_v30, %v1984_v14  ;;  %v1376_v39 = vld [vmem:[#allocation3 + $0x8] sm:$0xff] }
 0x193   : > { %v1163_v28 = vmul.f32 %v1159_v31, %v1137_v23  ;;  %v1158_v16 = vmin.f32 %v1154_v32, 6.0  ;;  %v1157_v35 = vmax.f32 %v1153_v34, 0.0  ;;  %v1152_v36 = vadd.f32 3.0, %v1142_v27 }
 0x195   : > { %v1167_v37 = vmul.f32 0.16666667, %v1163_v28  ;;  %v1162_v40 = vmul.f32 %v1158_v16, %v1132_v24  ;;  %v1161_v41 = vmin.f32 %v1157_v35, 6.0  ;;  %v1156_v42 = vmax.f32 %v1152_v36, 0.0  ;;  %v1378_v31 = vld [vmem:[#allocation3 + $0x18] sm:$0xff]  ;;  %v1377_v28 = vld [vmem:[#allocation3 + $0x10] sm:$0xff] }
 0x197   : > { %v1166_v33 = vmul.f32 0.16666667, %v1162_v40  ;;  %v1165_v45 = vmul.f32 %v1161_v41, %v1147_v29  ;;  %v1160_v46 = vmin.f32 %v1156_v42, 6.0  ;;  %v1366_v47 = vsel %vm409_vm1, %v1167_v37, 0.0  ;;  %v1375_v29 = vld [vmem:[#allocation3] sm:$0xff] }
 0x198   : > { %1367 = vadd.xlane.f32.xlu1 %v1366_v47 }
 0x199   : > { %v1169_v12 = vmul.f32 0.16666667, %v1165_v45  ;;  %v1164_v48 = vmul.f32 %v1160_v46, %v1142_v27  ;;  %v1363_v49 = vsel %vm409_vm1, %v1166_v33, 0.0 }
 0x19a   : > { %1364 = vadd.xlane.f32.xlu0 %v1363_v49 }
 0x19b   : > { %v1168_v14 = vmul.f32 0.16666667, %v1164_v48  ;;  %1653 = vmatprep.subr.mxu0 %v1169_v12  ;;  %v1372_v50 = vsel %vm409_vm1, %v1169_v12, 0.0 }
 0x19c   : > { %1654 = vmatpush3.msra.mxu0 %v1169_v12 }
 0x19d   : > { %1655 = vmatprep.subr.mxu0 %v1168_v14  ;;  %v1369_v54 = vsel %vm409_vm1, %v1168_v14, 0.0 }
 0x19e   : > { %1656 = vmatpush3.msra.mxu0 %v1168_v14  ;;  %1373 = vadd.xlane.f32.xlu0 %v1372_v50 }
 0x19f   : > { %1657 = vmatprep.subr.mxu0 %v1167_v37 }
 0x1a0   : > { %1658 = vmatpush3.msra.mxu0 %v1167_v37 }
 0x1a1   : > { %1659 = vmatprep.subr.mxu0 %v1166_v33 }
 0x1a2   : > { %1660 = vmatpush3.msra.mxu0 %v1166_v33  ;;  %1370 = vadd.xlane.f32.xlu0 %v1369_v54 }
 0x1a3   : > { %1662 = vmatmul.mubr.msk.f32.vlgmr.msra.gmra.mxu0 %vm899_vm9, %v1171_v52 }
 0x1a4   : > { %1664 = vmatprep.mubr.msk.f32.mxu0 %vm899_vm9, %v1172_v55 }
 0x1a7   : > { %1665 = vmatmul.mubr.msk.f32.gmra.mxu0 %vm899_vm9, %v1173_v57 }
 0x1a8   : > { %1667 = vmatprep.mubr.msk.f32.mxu0 %vm899_vm9, %v1174_v58 }
 0x1a9   : > { %1218 = vperm.xlu1 %1700, %v1184_v59  }
 0x1ab   : > { %1668 = vmatmul.mubr.msk.f32.gmra.mxu0 %vm899_vm9, %v1175_v60 }
 0x1ac   : > { %1670 = vmatprep.mubr.msk.f32.mxu0 %vm899_vm9, %v1176_v10 }
 0x1af   : > { %1671 = vmatmul.mubr.msk.f32.gmra.mxu0 %vm899_vm9, %v1177_v11 }
 0x1b8   : > { %1223 = vperm.xlu0 %1699, %v1185_v13  }
 0x1c6   : > { %v1635_v15 = vpop.f32.mrf.mxu1 }
 0x1c7   : > { %v996_v17 = vadd.f32 %v1635_v15, %v2024_v61 }
 0x1c8   : > { %v990_v18 = vpop.f32.mrf.mxu1 }
 0x1c9   : > { %1030 = vst.msk [vmem:[%s388_s15 + $0x8] sm:$0xff] %vm409_vm1, %v996_v17  ;;  %v991_v19 = vadd.f32 %v990_v18, %v2036_v63 }
 0x1ca   : > { %v1638_v22 = vpop.f32.mrf.mxu1 }
 0x1cb   : > { %1029 = vst.msk [vmem:[%s388_s15] sm:$0xff] %vm409_vm1, %v991_v19  ;;  %v1006_v23 = vadd.f32 %v1638_v22, %v2038_v0 }
 0x1cc   : > { %v1000_v38 = vpop.f32.mrf.mxu1 }
 0x1cd   : > { %1032 = vst.msk [vmem:[%s388_s15 + $0x18] sm:$0xff] %vm409_vm1, %v1006_v23  ;;  %v1001_v20 = vadd.f32 %v1000_v38, %v2034_v62 }
 0x1ce   : > { %v1641_v21 = vpop.f32.mrf.mxu1 }
 0x1cf   : > { %1031 = vst.msk [vmem:[%s388_s15 + $0x10] sm:$0xff] %vm409_vm1, %v1001_v20  ;;  %v1016_v61 = vadd.f32 %v1641_v21, %v2042_v2 }
 0x1d0   : > { %v1010_v43 = vpop.f32.mrf.mxu1 }
 0x1d1   : > { %1034 = vst.msk [vmem:[%s388_s15 + $0x28] sm:$0xff] %vm409_vm1, %v1016_v61  ;;  %v1011_v63 = vadd.f32 %v1010_v43, %v2040_v1 }
 0x1d2   : > { %v1644_v24 = vpop.f32.mrf.mxu1 }
 0x1d3   : > { %1033 = vst.msk [vmem:[%s388_s15 + $0x20] sm:$0xff] %vm409_vm1, %v1011_v63  ;;  %v1026_v0 = vadd.f32 %v1644_v24, %v2044_v3 }
 0x1d4   : > { %v1020_v25 = vpop.f32.mrf.mxu1 }
 0x1d5   : > { %1036 = vst.msk [vmem:[%s388_s15 + $0x38] sm:$0xff] %vm409_vm1, %v1026_v0  ;;  %v1021_v62 = vadd.f32 %v1020_v25, %v2046_v4 }
 0x1d7   : > { %1035 = vst.msk [vmem:[%s388_s15 + $0x30] sm:$0xff] %vm409_vm1, %v1021_v62 }
 0x221   : > { %v1368_v2 = vpop.xlane.xlu1 %1367 }
 0x222   : > { %v1380_v26 = vadd.f32 %v1376_v39, %v1368_v2 }
 0x223   : > { %v1365_v1 = vpop.xlane.xlu0 %1364 }
 0x224   : > { %v1384_v30 = vmul.f32 0.03125, %v1380_v26  ;;  %v1379_v3 = vadd.f32 %v1375_v29, %v1365_v1 }
 0x225   : > { %v1219_v50 = vpop.permute.xlu1 %1218 }
 0x226   : > { %1388 = vst.msk [vmem:[%s375_s19 + $0x8] sm:$0xff] %vm411_vm11, %v1384_v30  ;;  %v1383_v32 = vmul.f32 0.03125, %v1379_v3 }
 0x227   : > { %v1374_v4 = vpop.xlane.xlu0 %1373 }
 0x228   : > { %1387 = vst.msk [vmem:[%s375_s19] sm:$0xff] %vm411_vm11, %v1383_v32  ;;  %v1382_v34 = vadd.f32 %v1378_v31, %v1374_v4 }
 0x22a   : > { %v1386_v27 = vmul.f32 0.03125, %v1382_v34 }
 0x22b   : > { %v1371_v16 = vpop.xlane.xlu0 %1370 }
 0x22c   : > { %1390 = vst.msk [vmem:[%s375_s19 + $0x18] sm:$0xff] %vm411_vm11, %v1386_v27  ;;  %v1381_v35 = vadd.f32 %v1377_v28, %v1371_v16 }
 0x22e   : > { %v1385_v36 = vmul.f32 0.03125, %v1381_v35 }
 0x230   : > { %1389 = vst.msk [vmem:[%s375_s19 + $0x10] sm:$0xff] %vm411_vm11, %v1385_v36 }
 0x233   : > { %v1224_v49 = vpop.permute.xlu0 %1223 }
 0x263   : > { %v1663_v37 = vpop.f32.mrf.mxu0 }
 0x264   : > { %v1322_v40 = vadd.f32 %v1663_v37, %v2048_v5 }
 0x265   : > { %v1316_v41 = vpop.f32.mrf.mxu0 }
 0x266   : > { %1356 = vst.msk [vmem:[%s380_s22 + $0x8] sm:$0xff] %vm409_vm1, %v1322_v40  ;;  %v1317_v42 = vadd.f32 %v1316_v41, %v2050_v6 }
 0x267   : > { %v1666_v33 = vpop.f32.mrf.mxu0 }
 0x268   : > { %1355 = vst.msk [vmem:[%s380_s22] sm:$0xff] %vm409_vm1, %v1317_v42  ;;  %v1332_v45 = vadd.f32 %v1666_v33, %v2052_v7 }
 0x269   : > { %v1326_v46 = vpop.f32.mrf.mxu0 }
 0x26a   : > { %1358 = vst.msk [vmem:[%s380_s22 + $0x18] sm:$0xff] %vm409_vm1, %v1332_v45  ;;  %v1327_v47 = vadd.f32 %v1326_v46, %v2054_v44 }
 0x26b   : > { %v1669_v12 = vpop.f32.mrf.mxu0 }
 0x26c   : > { %1357 = vst.msk [vmem:[%s380_s22 + $0x10] sm:$0xff] %vm409_vm1, %v1327_v47  ;;  %v1342_v5 = vadd.f32 %v1669_v12, %v2056_v8 }
 0x26d   : > { %v1336_v48 = vpop.f32.mrf.mxu0 }
 0x26e   : > { %1360 = vst.msk [vmem:[%s380_s22 + $0x28] sm:$0xff] %vm409_vm1, %v1342_v5  ;;  %v1337_v6 = vadd.f32 %v1336_v48, %v2058_v9 }
 0x26f   : > { %v1672_v14 = vpop.f32.mrf.mxu0 }
 0x270   : > { %1359 = vst.msk [vmem:[%s380_s22 + $0x20] sm:$0xff] %vm409_vm1, %v1337_v6  ;;  %v1352_v7 = vadd.f32 %v1672_v14, %v1224_v49 }
 0x271   : > { %v1346_v51 = vpop.f32.mrf.mxu0 }
 0x272   : > { %1362 = vst.msk [vmem:[%s380_s22 + $0x38] sm:$0xff] %vm409_vm1, %v1352_v7  ;;  %v1347_v44 = vadd.f32 %v1346_v51, %v1219_v50 }
 0x274   : > { %1361 = vst.msk [vmem:[%s380_s22 + $0x30] sm:$0xff] %vm409_vm1, %v1347_v44 }
 0x275 PF: > { %s20_s11 = sadd.s32 1, %s1723_s11   ;;  %s2173_s30 = smov %s1719_s10 }
 0x276   : > { %p17_p5 = scmp.ge.s32.totalorder %s20_s11, 4   ;;  %s2174_s10 = smov %s2176_s12 }
 0x278   :  { %19 = sbr.rel (!%p17_p5) target bundleno = 2 (0x2), region = 110 }

</bundles_post_ra>
